<compile_context>
chip_gen: v7x
topology: tpu7x:2x2x1
jax: 0.10.0
libtpu: 0.0.40
codegen_flags: <defaults>
</compile_context>

<pallas_src>
import jax
import jax.numpy as jnp
import numpy as np
from jax.experimental import pallas as pl
from jax.experimental.pallas import tpu as pltpu

BN_EPS = 1e-5


# ------------------------------ fused kernel --------------------------------

def _gin_stack_kernel(eps_ref,            # SMEM (L,)       per-layer GIN eps
                      idx_ref,            # VMEM (1, E)     scatter indices
                      comb_ref,           # VMEM (E, Din)   cat(tgt_feats, edge_feats)
                      h_ref,              # VMEM (N, H)     input node features
                      weT_ref,            # VMEM (L, Din, H) edge-transform W^T
                      be_ref,             # VMEM (L, 1, H)   edge-transform bias
                      w1T_ref,            # VMEM (L, H, H)   mlp_layer1 W^T
                      gamma_ref,          # VMEM (L, 1, H)   BN gamma
                      beta_ref,           # VMEM (L, 1, H)   BN beta
                      w2T_ref,            # VMEM (L, H, H)   mlp_layer2 W^T
                      woutT_ref,          # VMEM (L*H, O)    lin_out W^T
                      bout_ref,           # VMEM (1, O)      lin_out bias
                      out_ref):           # VMEM (N, O)
    N = h_ref.shape[0]
    E = comb_ref.shape[0]
    L = weT_ref.shape[0]
    H = w1T_ref.shape[1]
    O = out_ref.shape[1]

    # One-hot scatter matrix is layer-invariant -> build exactly once.
    rows = jax.lax.broadcasted_iota(jnp.int32, (N, E), 0)
    onehot = (idx_ref[...] == rows).astype(jnp.float32)

    comb = comb_ref[...]
    h = h_ref[...]
    final = jnp.zeros((N, O), jnp.float32)

    for l in range(L):  # static unroll, L known at trace time
        # 1) relu(edge_transform_linear(cat(target_feats, edge_feats)))   [E,H]
        msgs = jnp.dot(comb, weT_ref[l],
                       preferred_element_type=jnp.float32) + be_ref[l]
        msgs = jnp.maximum(msgs, 0.0)

        # 2) scatter_add(msgs, src_idx, dim_size=N) == onehot @ msgs      [N,H]
        agg = jnp.dot(onehot, msgs, preferred_element_type=jnp.float32)

        # 3) GIN update: (1 + eps) * h + aggregated_msgs
        u = (1.0 + eps_ref[l]) * h + agg

        # 4) MLP: linear1(no bias) -> BatchNorm1d(train stats) -> relu -> linear2
        z = jnp.dot(u, w1T_ref[l], preferred_element_type=jnp.float32)
        if N > 1:  # static branch, mirrors `if h.shape[0] == 1:` in MLP.forward
            mean = jnp.mean(z, axis=0, keepdims=True)
            var = jnp.mean((z - mean) ** 2, axis=0, keepdims=True)
            z = (z - mean) * jax.lax.rsqrt(var + BN_EPS)
            z = z * gamma_ref[l] + beta_ref[l]
        z = jnp.maximum(z, 0.0)
        h = jnp.dot(z, w2T_ref[l], preferred_element_type=jnp.float32)

        # 5) fold torch.cat(layer_outputs) @ Wout.T into a running sum
        final = final + jnp.dot(h, woutT_ref[l * H:(l + 1) * H, :],
                                preferred_element_type=jnp.float32)

    out_ref[...] = final + bout_ref[...]


# -------------------------------- wrapper ------------------------------------

def gin_stack_forward(params, x_src_unique, unique_src_idx,
                      path_src_idx, path_tgt_feats, path_edge_feats):
    # Host-side glue (one-time): concat of neighbor/edge feats, index reshape,
    # stacking + pre-transposing weights so no .T is needed inside the kernel.
    comb = jnp.concatenate([path_tgt_feats, path_edge_feats], axis=-1)
    idx2d = path_src_idx.astype(jnp.int32).reshape(1, -1)

    layers = params["layers"]
    weT = jnp.stack([lp["We"].T for lp in layers])        # [L, Din, H]
    be = jnp.stack([lp["be"] for lp in layers])           # [L, 1, H]
    w1T = jnp.stack([lp["W1"].T for lp in layers])        # [L, H, H]
    gamma = jnp.stack([lp["gamma"] for lp in layers])     # [L, 1, H]
    beta = jnp.stack([lp["beta"] for lp in layers])       # [L, 1, H]
    w2T = jnp.stack([lp["W2"].T for lp in layers])        # [L, H, H]
    eps = jnp.concatenate([lp["eps"].reshape(-1) for lp in layers])  # [L]
    woutT = params["Wout"].T                               # [L*H, O]
    bout = params["bout"]                                  # [1, O]

    N = x_src_unique.shape[0]
    E, Din = comb.shape
    L, H = w1T.shape[0], w1T.shape[1]
    O = woutT.shape[1]

    flops = 2 * L * (E * Din * H + N * E * H + 2 * N * H * H + N * H * O)
    bytes_accessed = 4 * (comb.size + idx2d.size + x_src_unique.size + weT.size
                          + be.size + w1T.size + gamma.size + beta.size
                          + w2T.size + woutT.size + bout.size + eps.size
                          + N * O)

    vmem = pl.BlockSpec(memory_space=pltpu.MemorySpace.VMEM)
    smem = pl.BlockSpec(memory_space=pltpu.MemorySpace.SMEM)

    final = pl.pallas_call(
        _gin_stack_kernel,
        out_shape=jax.ShapeDtypeStruct((N, O), jnp.float32),
        in_specs=[smem] + [vmem] * 11,
        out_specs=vmem,
        cost_estimate=pl.CostEstimate(flops=flops, transcendentals=0,
                                      bytes_accessed=bytes_accessed),
    )(eps, idx2d, comb, x_src_unique, weT, be, w1T, gamma, beta, w2T,
      woutT, bout)
    return final, unique_src_idx


# ---------------------------- reference (pure JAX) ---------------------------

def reference_forward(params, x, idx, tgt, edge):
    comb = jnp.concatenate([tgt, edge], -1)
    N = x.shape[0]
    h = x
    outs = []
    for lp in params["layers"]:
        msgs = jax.nn.relu(comb @ lp["We"].T + lp["be"][0])
        agg = jax.ops.segment_sum(msgs, idx, num_segments=N)
        u = (1.0 + lp["eps"][0, 0]) * h + agg
        z = u @ lp["W1"].T
        mean = z.mean(0)
        var = ((z - mean) ** 2).mean(0)
        z = (z - mean) / jnp.sqrt(var + BN_EPS) * lp["gamma"][0] + lp["beta"][0]
        h = jax.nn.relu(z) @ lp["W2"].T
        outs.append(h)
    hc = jnp.concatenate(outs, 1)
    return hc @ params["Wout"].T + params["bout"][0]


# ------------------------------ param init -----------------------------------

def xavier_uniform(key, shape):
    fan_out, fan_in = shape
    lim = np.sqrt(6.0 / (fan_in + fan_out))
    return jax.random.uniform(key, shape, jnp.float32, -lim, lim)


def torch_linear_init(key, shape):
    fan_in = shape[-1]
    lim = 1.0 / np.sqrt(fan_in)
    return jax.random.uniform(key, shape, jnp.float32, -lim, lim)


def init_params(key, node_dim, edge_dim, hidden, out_final, num_layers):
    layers = []
    for _ in range(num_layers):
        key, k1, k2, k3, k4 = jax.random.split(key, 5)
        in_dim = node_dim + edge_dim  # node_dim == hidden for stacking to work
        layers.append(dict(
            We=torch_linear_init(k1, (hidden, in_dim)),
            be=torch_linear_init(k2, (1, hidden)),
            W1=xavier_uniform(k3, (hidden, hidden)),
            gamma=jnp.ones((1, hidden), jnp.float32),
            beta=jnp.zeros((1, hidden), jnp.float32),
            W2=xavier_uniform(k4, (hidden, hidden)),
            eps=jnp.zeros((1, 1), jnp.float32),   # learn_eps=False, init_eps=0
        ))
    key, k5, k6 = jax.random.split(key, 3)
    Wout = torch_linear_init(k5, (out_final, hidden * num_layers))
    bout = torch_linear_init(k6, (1, out_final))
    return dict(layers=layers, Wout=Wout, bout=bout)


# ---------------------------------- main --------------------------------------

if __name__ == "__main__":
    N_SRC = 8          # unique source nodes
    N_EDGE = 16        # path / edge count
    NODE_DIM = 32      # input_node_dim (== hidden_dim, required by the module)
    EDGE_DIM = 16
    HIDDEN = 32
    OUT_FINAL = 8
    NUM_LAYERS = 2

    key = jax.random.PRNGKey(0)
    key, kx, kt, ke, ki, kp = jax.random.split(key, 6)

    x_src_unique = jax.random.normal(kx, (N_SRC, NODE_DIM), jnp.float32)
    path_target_node_features = jax.random.normal(kt, (N_EDGE, NODE_DIM), jnp.float32)
    path_edge_features = jax.random.normal(ke, (N_EDGE, EDGE_DIM), jnp.float32)
    path_source_indices = jax.random.randint(ki, (N_EDGE,), 0, N_SRC, jnp.int32)
    unique_src_to_process_indices = jnp.arange(N_SRC, dtype=jnp.int32)

    params = init_params(kp, NODE_DIM, EDGE_DIM, HIDDEN, OUT_FINAL, NUM_LAYERS)

    out, passthrough = gin_stack_forward(
        params, x_src_unique, unique_src_to_process_indices,
        path_source_indices, path_target_node_features, path_edge_features)
    out = jax.block_until_ready(out)

    ref = reference_forward(params, x_src_unique, path_source_indices,
                            path_target_node_features, path_edge_features)

    assert out.shape == (N_SRC, OUT_FINAL)
    np.testing.assert_allclose(np.asarray(out), np.asarray(ref),
                               rtol=1e-4, atol=1e-4)
    print("KERNEL_OK")
</pallas_src>

<mosaic_0001>
module attributes {stable_mosaic.version = 11 : i64} {
  func.func @_gin_stack_kernel(%arg0: memref<2xf32, #tpu.memory_space<smem>>, %arg1: memref<1x16xi32, #tpu.memory_space<vmem>>, %arg2: memref<16x48xf32, #tpu.memory_space<vmem>>, %arg3: memref<8x32xf32, #tpu.memory_space<vmem>>, %arg4: memref<2x48x32xf32, #tpu.memory_space<vmem>>, %arg5: memref<2x1x32xf32, #tpu.memory_space<vmem>>, %arg6: memref<2x32x32xf32, #tpu.memory_space<vmem>>, %arg7: memref<2x1x32xf32, #tpu.memory_space<vmem>>, %arg8: memref<2x1x32xf32, #tpu.memory_space<vmem>>, %arg9: memref<2x32x32xf32, #tpu.memory_space<vmem>>, %arg10: memref<64x8xf32, #tpu.memory_space<vmem>>, %arg11: memref<1x8xf32, #tpu.memory_space<vmem>>, %arg12: memref<8x8xf32, #tpu.memory_space<vmem>>) attributes {dimension_semantics = [], scalar_prefetch = 0 : i64, scratch_operands = 0 : i64, tpu.core_type = #tpu.core_type<tc>} {
    %0 = tpu.iota {dimensions = array<i32: 0>} : vector<8x16xi32>
    %c0 = arith.constant 0 : index
    %c0_0 = arith.constant 0 : index
    %1 = vector.load %arg1[%c0, %c0_0] : memref<1x16xi32, #tpu.memory_space<vmem>>, vector<1x16xi32>
    %2 = vector.broadcast %1 : vector<1x16xi32> to vector<8x16xi32>
    %3 = arith.cmpi eq, %2, %0 : vector<8x16xi32>
    %4 = arith.extui %3 : vector<8x16xi1> to vector<8x16xi32>
    %5 = arith.sitofp %4 : vector<8x16xi32> to vector<8x16xf32>
    %c0_1 = arith.constant 0 : index
    %c0_2 = arith.constant 0 : index
    %6 = vector.load %arg2[%c0_1, %c0_2] : memref<16x48xf32, #tpu.memory_space<vmem>>, vector<16x48xf32>
    %c0_3 = arith.constant 0 : index
    %c0_4 = arith.constant 0 : index
    %7 = vector.load %arg3[%c0_3, %c0_4] : memref<8x32xf32, #tpu.memory_space<vmem>>, vector<8x32xf32>
    %cst = arith.constant 0.000000e+00 : f32
    %8 = vector.broadcast %cst : f32 to vector<8x8xf32>
    %c0_5 = arith.constant 0 : index
    %c0_6 = arith.constant 0 : index
    %c0_7 = arith.constant 0 : index
    %9 = vector.load %arg4[%c0_5, %c0_6, %c0_7] : memref<2x48x32xf32, #tpu.memory_space<vmem>>, vector<1x48x32xf32>
    %10 = vector.shape_cast %9 : vector<1x48x32xf32> to vector<48x32xf32>
    %cst_8 = arith.constant dense<0.000000e+00> : vector<16x32xf32>
    %11 = tpu.matmul %6, %10, %cst_8 {dimension_numbers = #tpu.dot_dimension_numbers<[1], [0], [0], [1], [0, 0, 1, 1], [], []>} : vector<16x48xf32>, vector<48x32xf32>, vector<16x32xf32> -> vector<16x32xf32>
    %c0_9 = arith.constant 0 : index
    %c0_10 = arith.constant 0 : index
    %c0_11 = arith.constant 0 : index
    %12 = vector.load %arg5[%c0_9, %c0_10, %c0_11] : memref<2x1x32xf32, #tpu.memory_space<vmem>>, vector<1x1x32xf32>
    %13 = vector.shape_cast %12 : vector<1x1x32xf32> to vector<1x32xf32>
    %14 = vector.broadcast %13 : vector<1x32xf32> to vector<16x32xf32>
    %15 = arith.addf %11, %14 : vector<16x32xf32>
    %cst_12 = arith.constant 0.000000e+00 : f32
    %16 = vector.broadcast %cst_12 : f32 to vector<16x32xf32>
    %17 = arith.maximumf %15, %16 : vector<16x32xf32>
    %cst_13 = arith.constant dense<0.000000e+00> : vector<8x32xf32>
    %18 = tpu.matmul %5, %17, %cst_13 {dimension_numbers = #tpu.dot_dimension_numbers<[1], [0], [0], [1], [0, 0, 1, 1], [], []>} : vector<8x16xf32>, vector<16x32xf32>, vector<8x32xf32> -> vector<8x32xf32>
    %c0_14 = arith.constant 0 : index
    %19 = memref.load %arg0[%c0_14] : memref<2xf32, #tpu.memory_space<smem>>
    %cst_15 = arith.constant 1.000000e+00 : f32
    %20 = arith.addf %cst_15, %19 : f32
    %21 = vector.broadcast %20 : f32 to vector<8x32xf32>
    %22 = arith.mulf %21, %7 : vector<8x32xf32>
    %23 = arith.addf %22, %18 : vector<8x32xf32>
    %c0_16 = arith.constant 0 : index
    %c0_17 = arith.constant 0 : index
    %c0_18 = arith.constant 0 : index
    %24 = vector.load %arg6[%c0_16, %c0_17, %c0_18] : memref<2x32x32xf32, #tpu.memory_space<vmem>>, vector<1x32x32xf32>
    %25 = vector.shape_cast %24 : vector<1x32x32xf32> to vector<32x32xf32>
    %cst_19 = arith.constant dense<0.000000e+00> : vector<8x32xf32>
    %26 = tpu.matmul %23, %25, %cst_19 {dimension_numbers = #tpu.dot_dimension_numbers<[1], [0], [0], [1], [0, 0, 1, 1], [], []>} : vector<8x32xf32>, vector<32x32xf32>, vector<8x32xf32> -> vector<8x32xf32>
    %cst_20 = arith.constant dense<0.000000e+00> : vector<32xf32>
    %27 = vector.multi_reduction <add>, %26, %cst_20 [0] : vector<8x32xf32> to vector<32xf32>
    %28 = vector.shape_cast %27 : vector<32xf32> to vector<1x32xf32>
    %cst_21 = arith.constant 8.000000e+00 : f32
    %29 = vector.broadcast %cst_21 : f32 to vector<1x32xf32>
    %30 = arith.divf %28, %29 : vector<1x32xf32>
    %31 = vector.broadcast %30 : vector<1x32xf32> to vector<8x32xf32>
    %32 = arith.subf %26, %31 : vector<8x32xf32>
    %33 = arith.mulf %32, %32 : vector<8x32xf32>
    %cst_22 = arith.constant dense<0.000000e+00> : vector<32xf32>
    %34 = vector.multi_reduction <add>, %33, %cst_22 [0] : vector<8x32xf32> to vector<32xf32>
    %35 = vector.shape_cast %34 : vector<32xf32> to vector<1x32xf32>
    %cst_23 = arith.constant 8.000000e+00 : f32
    %36 = vector.broadcast %cst_23 : f32 to vector<1x32xf32>
    %37 = arith.divf %35, %36 : vector<1x32xf32>
    %38 = vector.broadcast %30 : vector<1x32xf32> to vector<8x32xf32>
    %39 = arith.subf %26, %38 : vector<8x32xf32>
    %cst_24 = arith.constant 9.99999974E-6 : f32
    %40 = vector.broadcast %cst_24 : f32 to vector<1x32xf32>
    %41 = arith.addf %37, %40 : vector<1x32xf32>
    %42 = math.rsqrt %41 : vector<1x32xf32>
    %43 = vector.broadcast %42 : vector<1x32xf32> to vector<8x32xf32>
    %44 = arith.mulf %39, %43 : vector<8x32xf32>
    %c0_25 = arith.constant 0 : index
    %c0_26 = arith.constant 0 : index
    %c0_27 = arith.constant 0 : index
    %45 = vector.load %arg7[%c0_25, %c0_26, %c0_27] : memref<2x1x32xf32, #tpu.memory_space<vmem>>, vector<1x1x32xf32>
    %46 = vector.shape_cast %45 : vector<1x1x32xf32> to vector<1x32xf32>
    %47 = vector.broadcast %46 : vector<1x32xf32> to vector<8x32xf32>
    %48 = arith.mulf %44, %47 : vector<8x32xf32>
    %c0_28 = arith.constant 0 : index
    %c0_29 = arith.constant 0 : index
    %c0_30 = arith.constant 0 : index
    %49 = vector.load %arg8[%c0_28, %c0_29, %c0_30] : memref<2x1x32xf32, #tpu.memory_space<vmem>>, vector<1x1x32xf32>
    %50 = vector.shape_cast %49 : vector<1x1x32xf32> to vector<1x32xf32>
    %51 = vector.broadcast %50 : vector<1x32xf32> to vector<8x32xf32>
    %52 = arith.addf %48, %51 : vector<8x32xf32>
    %cst_31 = arith.constant 0.000000e+00 : f32
    %53 = vector.broadcast %cst_31 : f32 to vector<8x32xf32>
    %54 = arith.maximumf %52, %53 : vector<8x32xf32>
    %c0_32 = arith.constant 0 : index
    %c0_33 = arith.constant 0 : index
    %c0_34 = arith.constant 0 : index
    %55 = vector.load %arg9[%c0_32, %c0_33, %c0_34] : memref<2x32x32xf32, #tpu.memory_space<vmem>>, vector<1x32x32xf32>
    %56 = vector.shape_cast %55 : vector<1x32x32xf32> to vector<32x32xf32>
    %cst_35 = arith.constant dense<0.000000e+00> : vector<8x32xf32>
    %57 = tpu.matmul %54, %56, %cst_35 {dimension_numbers = #tpu.dot_dimension_numbers<[1], [0], [0], [1], [0, 0, 1, 1], [], []>} : vector<8x32xf32>, vector<32x32xf32>, vector<8x32xf32> -> vector<8x32xf32>
    %c0_36 = arith.constant 0 : index
    %c0_37 = arith.constant 0 : index
    %58 = vector.load %arg10[%c0_36, %c0_37] : memref<64x8xf32, #tpu.memory_space<vmem>>, vector<32x8xf32>
    %cst_38 = arith.constant dense<0.000000e+00> : vector<8x8xf32>
    %59 = tpu.matmul %57, %58, %cst_38 {dimension_numbers = #tpu.dot_dimension_numbers<[1], [0], [0], [1], [0, 0, 1, 1], [], []>} : vector<8x32xf32>, vector<32x8xf32>, vector<8x8xf32> -> vector<8x8xf32>
    %60 = arith.addf %8, %59 : vector<8x8xf32>
    %c1 = arith.constant 1 : index
    %c0_39 = arith.constant 0 : index
    %c0_40 = arith.constant 0 : index
    %61 = vector.load %arg4[%c1, %c0_39, %c0_40] : memref<2x48x32xf32, #tpu.memory_space<vmem>>, vector<1x48x32xf32>
    %62 = vector.shape_cast %61 : vector<1x48x32xf32> to vector<48x32xf32>
    %cst_41 = arith.constant dense<0.000000e+00> : vector<16x32xf32>
    %63 = tpu.matmul %6, %62, %cst_41 {dimension_numbers = #tpu.dot_dimension_numbers<[1], [0], [0], [1], [0, 0, 1, 1], [], []>} : vector<16x48xf32>, vector<48x32xf32>, vector<16x32xf32> -> vector<16x32xf32>
    %c1_42 = arith.constant 1 : index
    %c0_43 = arith.constant 0 : index
    %c0_44 = arith.constant 0 : index
    %64 = vector.load %arg5[%c1_42, %c0_43, %c0_44] : memref<2x1x32xf32, #tpu.memory_space<vmem>>, vector<1x1x32xf32>
    %65 = vector.shape_cast %64 : vector<1x1x32xf32> to vector<1x32xf32>
    %66 = vector.broadcast %65 : vector<1x32xf32> to vector<16x32xf32>
    %67 = arith.addf %63, %66 : vector<16x32xf32>
    %cst_45 = arith.constant 0.000000e+00 : f32
    %68 = vector.broadcast %cst_45 : f32 to vector<16x32xf32>
    %69 = arith.maximumf %67, %68 : vector<16x32xf32>
    %cst_46 = arith.constant dense<0.000000e+00> : vector<8x32xf32>
    %70 = tpu.matmul %5, %69, %cst_46 {dimension_numbers = #tpu.dot_dimension_numbers<[1], [0], [0], [1], [0, 0, 1, 1], [], []>} : vector<8x16xf32>, vector<16x32xf32>, vector<8x32xf32> -> vector<8x32xf32>
    %c1_47 = arith.constant 1 : index
    %71 = memref.load %arg0[%c1_47] : memref<2xf32, #tpu.memory_space<smem>>
    %cst_48 = arith.constant 1.000000e+00 : f32
    %72 = arith.addf %cst_48, %71 : f32
    %73 = vector.broadcast %72 : f32 to vector<8x32xf32>
    %74 = arith.mulf %73, %57 : vector<8x32xf32>
    %75 = arith.addf %74, %70 : vector<8x32xf32>
    %c1_49 = arith.constant 1 : index
    %c0_50 = arith.constant 0 : index
    %c0_51 = arith.constant 0 : index
    %76 = vector.load %arg6[%c1_49, %c0_50, %c0_51] : memref<2x32x32xf32, #tpu.memory_space<vmem>>, vector<1x32x32xf32>
    %77 = vector.shape_cast %76 : vector<1x32x32xf32> to vector<32x32xf32>
    %cst_52 = arith.constant dense<0.000000e+00> : vector<8x32xf32>
    %78 = tpu.matmul %75, %77, %cst_52 {dimension_numbers = #tpu.dot_dimension_numbers<[1], [0], [0], [1], [0, 0, 1, 1], [], []>} : vector<8x32xf32>, vector<32x32xf32>, vector<8x32xf32> -> vector<8x32xf32>
    %cst_53 = arith.constant dense<0.000000e+00> : vector<32xf32>
    %79 = vector.multi_reduction <add>, %78, %cst_53 [0] : vector<8x32xf32> to vector<32xf32>
    %80 = vector.shape_cast %79 : vector<32xf32> to vector<1x32xf32>
    %cst_54 = arith.constant 8.000000e+00 : f32
    %81 = vector.broadcast %cst_54 : f32 to vector<1x32xf32>
    %82 = arith.divf %80, %81 : vector<1x32xf32>
    %83 = vector.broadcast %82 : vector<1x32xf32> to vector<8x32xf32>
    %84 = arith.subf %78, %83 : vector<8x32xf32>
    %85 = arith.mulf %84, %84 : vector<8x32xf32>
    %cst_55 = arith.constant dense<0.000000e+00> : vector<32xf32>
    %86 = vector.multi_reduction <add>, %85, %cst_55 [0] : vector<8x32xf32> to vector<32xf32>
    %87 = vector.shape_cast %86 : vector<32xf32> to vector<1x32xf32>
    %cst_56 = arith.constant 8.000000e+00 : f32
    %88 = vector.broadcast %cst_56 : f32 to vector<1x32xf32>
    %89 = arith.divf %87, %88 : vector<1x32xf32>
    %90 = vector.broadcast %82 : vector<1x32xf32> to vector<8x32xf32>
    %91 = arith.subf %78, %90 : vector<8x32xf32>
    %cst_57 = arith.constant 9.99999974E-6 : f32
    %92 = vector.broadcast %cst_57 : f32 to vector<1x32xf32>
    %93 = arith.addf %89, %92 : vector<1x32xf32>
    %94 = math.rsqrt %93 : vector<1x32xf32>
    %95 = vector.broadcast %94 : vector<1x32xf32> to vector<8x32xf32>
    %96 = arith.mulf %91, %95 : vector<8x32xf32>
    %c1_58 = arith.constant 1 : index
    %c0_59 = arith.constant 0 : index
    %c0_60 = arith.constant 0 : index
    %97 = vector.load %arg7[%c1_58, %c0_59, %c0_60] : memref<2x1x32xf32, #tpu.memory_space<vmem>>, vector<1x1x32xf32>
    %98 = vector.shape_cast %97 : vector<1x1x32xf32> to vector<1x32xf32>
    %99 = vector.broadcast %98 : vector<1x32xf32> to vector<8x32xf32>
    %100 = arith.mulf %96, %99 : vector<8x32xf32>
    %c1_61 = arith.constant 1 : index
    %c0_62 = arith.constant 0 : index
    %c0_63 = arith.constant 0 : index
    %101 = vector.load %arg8[%c1_61, %c0_62, %c0_63] : memref<2x1x32xf32, #tpu.memory_space<vmem>>, vector<1x1x32xf32>
    %102 = vector.shape_cast %101 : vector<1x1x32xf32> to vector<1x32xf32>
    %103 = vector.broadcast %102 : vector<1x32xf32> to vector<8x32xf32>
    %104 = arith.addf %100, %103 : vector<8x32xf32>
    %cst_64 = arith.constant 0.000000e+00 : f32
    %105 = vector.broadcast %cst_64 : f32 to vector<8x32xf32>
    %106 = arith.maximumf %104, %105 : vector<8x32xf32>
    %c1_65 = arith.constant 1 : index
    %c0_66 = arith.constant 0 : index
    %c0_67 = arith.constant 0 : index
    %107 = vector.load %arg9[%c1_65, %c0_66, %c0_67] : memref<2x32x32xf32, #tpu.memory_space<vmem>>, vector<1x32x32xf32>
    %108 = vector.shape_cast %107 : vector<1x32x32xf32> to vector<32x32xf32>
    %cst_68 = arith.constant dense<0.000000e+00> : vector<8x32xf32>
    %109 = tpu.matmul %106, %108, %cst_68 {dimension_numbers = #tpu.dot_dimension_numbers<[1], [0], [0], [1], [0, 0, 1, 1], [], []>} : vector<8x32xf32>, vector<32x32xf32>, vector<8x32xf32> -> vector<8x32xf32>
    %c32 = arith.constant 32 : index
    %c0_69 = arith.constant 0 : index
    %110 = vector.load %arg10[%c32, %c0_69] : memref<64x8xf32, #tpu.memory_space<vmem>>, vector<32x8xf32>
    %cst_70 = arith.constant dense<0.000000e+00> : vector<8x8xf32>
    %111 = tpu.matmul %109, %110, %cst_70 {dimension_numbers = #tpu.dot_dimension_numbers<[1], [0], [0], [1], [0, 0, 1, 1], [], []>} : vector<8x32xf32>, vector<32x8xf32>, vector<8x8xf32> -> vector<8x8xf32>
    %112 = arith.addf %60, %111 : vector<8x8xf32>
    %c0_71 = arith.constant 0 : index
    %c0_72 = arith.constant 0 : index
    %113 = vector.load %arg11[%c0_71, %c0_72] : memref<1x8xf32, #tpu.memory_space<vmem>>, vector<1x8xf32>
    %114 = vector.broadcast %113 : vector<1x8xf32> to vector<8x8xf32>
    %115 = arith.addf %112, %114 : vector<8x8xf32>
    %c0_73 = arith.constant 0 : index
    %c0_74 = arith.constant 0 : index
    %116 = vector.load %arg12[%c0_73, %c0_74] : memref<8x8xf32, #tpu.memory_space<vmem>>, vector<8x8xf32>
    tpu.vector_store %arg12[%c0_73, %c0_74], %115 {strides = array<i32>} : memref<8x8xf32, #tpu.memory_space<vmem>>, vector<8x8xf32>,
    return
  }
}

</mosaic_0001>

<bundles_post_ra>
// kernel: tpu_custom_call.1
= control target key start
LH: loop header
LB: loop body
LE: loop exit
PB: predicated region body
PF: predicated region fallthrough
CT: control target
= control target key end

     0   :  { %17 = vsyncpa [#allocation4], 0  ;;  %s1583_s0 = inlined_call_operand.vmem [shape: f32[2], index: 0, kind: input, shape index: {}]   ;;  %s1584_s1 = inlined_call_operand.vmem [shape: s32[1,16], index: 1, kind: input, shape index: {}]   ;;  %s1585_s2 = inlined_call_operand.vmem [shape: f32[16,48], index: 2, kind: input, shape index: {}]   ;;  %s1586_s3 = inlined_call_operand.vmem [shape: f32[8,32], index: 3, kind: input, shape index: {}]   ;;  %s1587_s4 = inlined_call_operand.vmem [shape: f32[2,48,32], index: 4, kind: input, shape index: {}]   ;;  %s1588_s5 = inlined_call_operand.vmem [shape: f32[2,1,32], index: 5, kind: input, shape index: {}]   ;;  %s1589_s6 = inlined_call_operand.vmem [shape: f32[2,32,32], index: 6, kind: input, shape index: {}]   ;;  %s1590_s7 = inlined_call_operand.vmem [shape: f32[2,1,32], index: 7, kind: input, shape index: {}]   ;;  %s1591_s8 = inlined_call_operand.vmem [shape: f32[2,1,32], index: 8, kind: input, shape index: {}]   ;;  %s1592_s9 = inlined_call_operand.vmem [shape: f32[2,32,32], index: 9, kind: input, shape index: {}]   ;;  %s1593_s10 = inlined_call_operand.vmem [shape: f32[64,8], index: 10, kind: input, shape index: {}]   ;;  %s1594_s11 = inlined_call_operand.vmem [shape: f32[1,8], index: 11, kind: input, shape index: {}]   ;;  %s1595_s12 = inlined_call_operand.hbm [shape: f32[8,8], index: 12, kind: output, shape index: {}]  }
   0x1   :  { %18 = vsyncpa [#allocation3], 0  ;;  %s25_s23 = sshll.u32 %s1583_s0, 4  ;;  %s26_s23 = int_to_ptr.vmem [resolvable:$true] %s25_s23 }
   0x2   :  { %s1256_s24 = scalar_lea.vmem %s26_s23, 16  ;;  %p1261_p1 = scmp.lt.s32.totalorder %s26_s23, %s26_s23 }
   0x3   :  { %p1257_p0 = scmp.ne.s32.totalorder %s26_s23, %s1256_s24  ;;  %p1262_p2 = scmp.lt.s32.totalorder %s1256_s24, %s1256_s24 }
   0x5   :  { %p1263_p3 = por %p1262_p2, %p1261_p1 }
   0x7   :  { %p1264_p4 = pnand %p1263_p3, %p1257_p0 }
   0x9   :  { %1267 = shalt.err (!%p1264_p4)
}
   0xa   :  { %s1294_s25 = smov [#allocation2]  }
   0xb   :  { %28 = dma.vmem_to_smem %s26_s23, 16, %s1294_s25, [#allocation4]  }
   0xc   :  { %1290 = dma.done.wait [#allocation4], 16  }
   0xd   :  { %1291 = vsyncadd [#allocation4], 4294967280 }
   0xe   :  { %54 = sfence }
   0xf   :  { %v68_v0 = vld [vmem:[%s1587_s4] sm:$0xff]  ;;  %v69_v1 = vld [vmem:[%s1587_s4 + $0x8] sm:$0xff]  ;;  %v70_v2 = vld [vmem:[%s1587_s4 + $0x10] sm:$0xff]  ;;  %vm81_vm0 = vcmask 392192   ;;  %v1295_v11 = vmov 0.0|0.0   ;;  %vm1296_vm1 = vmmov 0   ;;  %v55_v13 = vlaneseq }
  0x10   :  { %v1181_v3 = vpack.c.bf16 %v69_v1, %v68_v0  ;;  %v71_v4 = vld [vmem:[%s1587_s4 + $0x18] sm:$0xff]  ;;  %v72_v6 = vld [vmem:[%s1587_s4 + $0x20] sm:$0xff]  ;;  %v73_v7 = vld [vmem:[%s1587_s4 + $0x28] sm:$0xff]  ;;  %1193 = vmatprep.subr.bf16.mxu1 %v1295_v11  ;;  %v1297_v12 = vmov 0.0   ;;  %vm165_vm3 = vcmask 130048   ;;  %s239_s18 = sld [smem:[#allocation2]] }
  0x11   :  { %v1185_v5 = vpack.c.bf16 %v71_v4, %v70_v2  ;;  %v1388_v8 = vld [vmem:[%s1585_s2] sm:$0xff]  ;;  %v1189_v9 = vpack.c.bf16 %v73_v7, %v72_v6  ;;  %v1395_v10 = vld [vmem:[%s1585_s2 + $0x8] sm:$0xff]  ;;  %1090 = vmatprep.mubr.msk.f32.mxu1 %vm1296_vm1, %v1297_v12  ;;  %v56_v18 = vshrl.u32 %v55_v13, 7  ;;  %v246_v28 = vld [vmem:[%s1589_s6 + $0x10] sm:$0xff]  ;;  %vm248_vm4 = vcmask 261120  }
  0x12   :  { %1182 = vmatprep.subr.bf16.mxu0 %v1181_v3  ;;  %1083 = vmatprep.mubr.msk.f32.mxu0 %vm81_vm0, %v1388_v8  ;;  %v982_v14 = vld [vmem:[%s1588_s5] ss:$0 sm:$0xff]  ;;  %v245_v24 = vld [vmem:[%s1589_s6 + $0x8] sm:$0xff]  ;;  %v247_v29 = vld [vmem:[%s1589_s6 + $0x18] sm:$0xff]  ;;  %vm963_vm5 = vcmask 64512  }
  0x13   :  { %1184 = vmatpush3.bf16.msra.mxu0 %v1181_v3  ;;  %v980_v20 = vld [vmem:[%s1584_s1] ss:$0 sm:$0xff]  ;;  %v1200_v30 = vpack.c.bf16 %v247_v29, %v246_v28  ;;  %v990_v31 = vld [vmem:[%s1587_s4 + $0x30] sm:$0xff]  ;;  %v991_v32 = vld [vmem:[%s1587_s4 + $0x38] sm:$0xff] }
  0x14   :  { %1186 = vmatprep.subr.bf16.mxu0 %v1185_v5  ;;  %vm62_vm2 = vcmp.eq.s32.totalorder %v980_v20, %v56_v18  ;;  %v244_v23 = vld [vmem:[%s1589_s6] sm:$0xff]  ;;  %v1208_v33 = vpack.c.bf16 %v991_v32, %v990_v31  ;;  %v993_v38 = vld [vmem:[%s1587_s4 + $0x48] sm:$0xff]  ;;  %v994_v43 = vld [vmem:[%s1587_s4 + $0x50] sm:$0xff] }
  0x15   :  { %v1418_v26 = vsel %vm62_vm2, 1.0, %v1297_v12  ;;  %v1197_v27 = vpack.c.bf16 %v245_v24, %v244_v23  ;;  %v67_v34 = vld [vmem:[%s1586_s3] sm:$0xff]  ;;  %v995_v44 = vld [vmem:[%s1587_s4 + $0x58] sm:$0xff]  ;;  %v362_v47 = vld [vmem:[%s1592_s9 + $0x8] sm:$0xff]  ;;  %s1001_s3 = sld [smem:[#allocation2 + $0x1]] }
  0x16   :  { %s240_s19 = sadd.f32 1.0, %s239_s18  ;;  %v992_v37 = vld [vmem:[%s1587_s4 + $0x40] sm:$0xff]  ;;  %v1216_v45 = vpack.c.bf16 %v995_v44, %v994_v43  ;;  %v363_v49 = vld [vmem:[%s1592_s9 + $0x10] sm:$0xff]  ;;  %v364_v50 = vld [vmem:[%s1592_s9 + $0x18] sm:$0xff]  ;;  %s1298_s4 = smov [#allocation5]  }
  0x17   :  { %1188 = vmatpush3.bf16.msra.mxu0 %v1185_v5  ;;  %v1212_v42 = vpack.c.bf16 %v993_v38, %v992_v37  ;;  %v361_v46 = vld [vmem:[%s1592_s9] sm:$0xff]  ;;  %v1206_v51 = vpack.c.bf16 %v364_v50, %v363_v49  ;;  %v1003_v28 = vld [vmem:[%s1589_s6 + $0x28] sm:$0xff]  ;;  %v1014_v43 = vld [vmem:[%s1592_s9 + $0x38] sm:$0xff]  ;;  %s971_s28 = sshll.u32 %s1298_s4, 4  ;;  %s972_s28 = int_to_ptr.vmem [resolvable:$true] %s971_s28 }
  0x18   :  { %1190 = vmatprep.subr.bf16.mxu0 %v1189_v9  ;;  %v241_v35 = vstv %s240_s19  ;;  %v1203_v48 = vpack.c.bf16 %v362_v47, %v361_v46  ;;  %v997_v60 = vld [vmem:[%s1588_s5 + $0x1] ss:$0 sm:$0xff]  ;;  %v987_v20 = vld [vmem:[%s1590_s7] ss:$0 sm:$0xff]  ;;  %v806_v46 = vld [vmem:[%s1593_s10 + $0x28] sm:$0xff]  ;;  %s1268_s29 = scalar_lea.vmem %s972_s28, 128  ;;  %p1273_p6 = scmp.lt.s32.totalorder %s972_s28, %s972_s28 }
  0x19   :  { %v242_v36 = vmul.f32 %v241_v35, %v67_v34  ;;  %v807_v47 = vld [vmem:[%s1593_s10 + $0x30] sm:$0xff]  ;;  %v808_v49 = vld [vmem:[%s1593_s10 + $0x38] sm:$0xff]  ;;  %p1269_p5 = scmp.ne.s32.totalorder %s972_s28, %s1268_s29  ;;  %p1274_p7 = scmp.lt.s32.totalorder %s1268_s29, %s1268_s29 }
  0x1a   :  { %v1239_v50 = vpack.c.bf16 %v808_v49, %v807_v47 }
  0x1b   :  { %1192 = vmatpush3.bf16.msra.mxu0 %v1189_v9  ;;  %s605_s27 = sadd.f32 1.0, %s1001_s3  ;;  %p1275_p8 = por %p1274_p7, %p1273_p6 }
  0x1c   :  { %1202 = vmatprep.subr.bf16.mxu0 %v1295_v11 }
  0x1d   :  { %p1276_p9 = pnand %p1275_p8, %p1269_p5 }
  0x1e   :  { %1084 = vmatmul.mubr.msk.f32.vlgmr.msra.gmra.mrb[0].mxu0 %vm81_vm0, %v1395_v10 }
  0x1f   :  { %1112 = vmatprep.mubr.msk.f32.mxu0 %vm1296_vm1, %v1297_v12  ;;  %1204 = vmatpush3.bf16.msra.mxu0 %v1203_v48 }
  0x20   :  { %1205 = vmatprep.subr.bf16.mxu0 %v1295_v11 }
  0x23   :  { %1207 = vmatpush3.bf16.msra.mxu0 %v1206_v51 }
  0x24   :  { %1220 = vmatprep.subr.bf16.mxu0 %v1295_v11 }
  0xf1   :  { %v1085_v15 = vpop.f32.mrb[0].mxu0 }
  0xf2   :  { %v160_v16 = vadd.f32 %v1085_v15, %v982_v14  ;;  %v154_v17 = vpop.f32.mrb[1].mxu0 }
  0xf3   :  { %v155_v19 = vadd.f32 %v982_v14, %v154_v17 }
  0xf4   :  { %v164_v21 = vmax.f32 %v160_v16, 0.0 }
  0xf5   :  { %v163_v22 = vmax.f32 %v155_v19, 0.0 }
  0xf7   :  { %v1194_v25 = vpack.c.bf16 %v164_v21, %v163_v22  ;;  %v988_v22 = vld [vmem:[%s1591_s8] ss:$0 sm:$0xff] }
  0xf9   :  { %1195 = vmatpush3.bf16.msra.mxu1 %v1194_v25 }
  0xfa   :  { %1196 = vmatprep.subr.bf16.mxu1 %v1295_v11 }
  0xfc   :  { %1091 = vmatmul.mubr.msk.f32.vlgmr.msra.gmra.mrb[0].mxu1 %vm165_vm3, %v1418_v26 }
  0xfd   :  { %1198 = vmatpush3.bf16.msra.mxu1 %v1197_v27  ;;  %1101 = vmatprep.mubr.msk.f32.mxu1 %vm1296_vm1, %v1297_v12  ;;  %v1002_v27 = vld [vmem:[%s1589_s6 + $0x20] sm:$0xff] }
  0xfe   :  { %1199 = vmatprep.subr.bf16.mxu1 %v1295_v11  ;;  %v1224_v29 = vpack.c.bf16 %v1003_v28, %v1002_v27 }
 0x101   :  { %1201 = vmatpush3.bf16.msra.mxu1 %v1200_v30  ;;  %v1004_v30 = vld [vmem:[%s1589_s6 + $0x30] sm:$0xff] }
 0x102   :  { %1209 = vmatprep.subr.bf16.mxu1 %v1208_v33 }
 0x1cf   :  { %v235_v39 = vpop.f32.mrb[0].mxu1 }
 0x1d0   :  { %v243_v40 = vadd.f32 %v242_v36, %v235_v39  ;;  %v1092_v41 = vpop.f32.mrb[1].mxu1  ;;  %v1011_v39 = vld [vmem:[%s1592_s9 + $0x20] sm:$0xff] }
 0x1d2   :  { %1102 = vmatmul.mubr.msk.f32.vlgmr.msra.gmra.mrb[2].mxu1 %vm248_vm4, %v243_v40  ;;  %v1012_v40 = vld [vmem:[%s1592_s9 + $0x28] sm:$0xff] }
 0x1d3   :  { %1211 = vmatpush3.bf16.msra.mxu1 %v1208_v33  ;;  %1127 = vmatprep.mubr.msk.f32.mxu1 %vm81_vm0, %v1388_v8  ;;  %v606_v33 = vstv %s605_s27  ;;  %v1230_v41 = vpack.c.bf16 %v1012_v40, %v1011_v39 }
 0x1d4   :  { %1213 = vmatprep.subr.bf16.mxu1 %v1212_v42 }
 0x1d7   :  { %1215 = vmatpush3.bf16.msra.mxu1 %v1212_v42  ;;  %v1013_v42 = vld [vmem:[%s1592_s9 + $0x30] sm:$0xff] }
 0x1d8   :  { %1217 = vmatprep.subr.bf16.mxu1 %v1216_v45  ;;  %v1233_v44 = vpack.c.bf16 %v1014_v43, %v1013_v42 }
 0x1db   :  { %1219 = vmatpush3.bf16.msra.mxu1 %v1216_v45  ;;  %v805_v45 = vld [vmem:[%s1593_s10 + $0x20] sm:$0xff] }
 0x1dc   :  { %1229 = vmatprep.subr.bf16.mxu1 %v1295_v11  ;;  %v1236_v48 = vpack.c.bf16 %v806_v46, %v805_v45 }
 0x1de   :  { %1128 = vmatmul.mubr.msk.f32.vlgmr.msra.gmra.mrb[4].mxu1 %vm81_vm0, %v1395_v10 }
 0x1df   :  { %1156 = vmatprep.mubr.msk.f32.mxu1 %vm1296_vm1, %v1297_v12  ;;  %1231 = vmatpush3.bf16.msra.mxu1 %v1230_v41 }
 0x1e0   :  { %1232 = vmatprep.subr.bf16.mxu1 %v1295_v11 }
 0x1e3   :  { %1234 = vmatpush3.bf16.msra.mxu1 %v1233_v44 }
 0x1e4   :  { %1241 = vmatprep.subr.bf16.mxu1 %v1295_v11 }
 0x2a5   :  { %v318_v52 = vpop.f32.mrb[2].mxu1 }
 0x2a6   :  { %v322_v53 = vsel %vm248_vm4, %v318_v52, 0.0  ;;  %v1103_v54 = vpop.f32.mrb[3].mxu1 }
 0x2a7   :  { %v323_v55 = vrot.slane %v322_v53, 4 }
 0x2a9   :  { %v324_v56 = vadd.f32 %v323_v55, %v322_v53 }
 0x2ab   :  { %v325_v57 = vrot.slane %v324_v56, 2 }
 0x2ad   :  { %v326_v58 = vadd.f32 %v325_v57, %v324_v56 }
 0x2af   :  { %v327_v59 = vrot.slane %v326_v58, 1 }
 0x2b1   :  { %v328_v61 = vadd.f32 %v327_v59, %v326_v58  ;;  %v1129_v62 = vpop.f32.mrb[4].mxu1 }
 0x2b2   :  { %v529_v63 = vadd.f32 %v1129_v62, %v997_v60  ;;  %v523_v0 = vpop.f32.mrb[5].mxu1 }
 0x2b3   :  { %v330_v1 = vmul.f32 0.125, %v328_v61  ;;  %v524_v2 = vadd.f32 %v997_v60, %v523_v0 }
 0x2b4   :  { %v533_v3 = vmax.f32 %v529_v63, 0.0 }
 0x2b5   :  { %v331_v4 = vsub.f32 %v318_v52, %v330_v1  ;;  %v532_v5 = vmax.f32 %v524_v2, 0.0 }
 0x2b7   :  { %v332_v6 = vmul.f32 %v331_v4, %v331_v4  ;;  %v1221_v7 = vpack.c.bf16 %v533_v3, %v532_v5 }
 0x2b9   :  { %v333_v8 = vsel %vm248_vm4, %v332_v6, 0.0 }
 0x2ba   :  { %v334_v9 = vrot.slane %v333_v8, 4 }
 0x2bc   :  { %v335_v10 = vadd.f32 %v334_v9, %v333_v8  ;;  %v1008_v9 = vld [vmem:[%s1590_s7 + $0x1] ss:$0 sm:$0xff] }
 0x2be   :  { %v336_v13 = vrot.slane %v335_v10, 2 }
 0x2c0   :  { %v337_v14 = vadd.f32 %v336_v13, %v335_v10  ;;  %v1010_v13 = vld [vmem:[%s1591_s8 + $0x1] ss:$0 sm:$0xff] }
 0x2c2   :  { %v338_v15 = vrot.slane %v337_v14, 1 }
 0x2c4   :  { %v339_v16 = vadd.f32 %v338_v15, %v337_v14  ;;  %v438_v15 = vld [vmem:[%s1593_s10] sm:$0xff] }
 0x2c6   :  { %v340_v17 = vmul.f32 0.125, %v339_v16  ;;  %v439_v16 = vld [vmem:[%s1593_s10 + $0x8] sm:$0xff] }
 0x2c8   :  { %v341_v18 = vadd.f32 1e-05, %v340_v17 }
 0x2ca   :  { %1252 = vrsqrt.f32 %v341_v18  ;;  %v1242_v18 = vpack.c.bf16 %v439_v16, %v438_v15 }
 0x2d4   :  { %v1253_v19 = vpop.eup %1252 }
 0x2d5   :  { %v343_v21 = vmul.f32 %v1253_v19, %v331_v4 }
 0x2d7   :  { %v351_v23 = vmul.f32 %v987_v20, %v343_v21  ;;  %v440_v20 = vld [vmem:[%s1593_s10 + $0x10] sm:$0xff]  ;;  %v441_v21 = vld [vmem:[%s1593_s10 + $0x18] sm:$0xff] }
 0x2d9   :  { %v359_v24 = vadd.f32 %v988_v22, %v351_v23  ;;  %v1245_v22 = vpack.c.bf16 %v441_v21, %v440_v20 }
 0x2db   :  { %v360_v25 = vmax.f32 %v359_v24, 0.0 }
 0x2dd   :  { %1113 = vmatmul.mubr.msk.f32.vlgmr.msra.gmra.mrb[2].mxu0 %vm248_vm4, %v360_v25 }
 0x2de   :  { %1222 = vmatpush3.bf16.msra.mxu0 %v1221_v7  ;;  %1134 = vmatprep.mubr.msk.f32.mxu0 %vm1296_vm1, %v1297_v12 }
 0x2df   :  { %1223 = vmatprep.subr.bf16.mxu0 %v1295_v11 }
 0x2e1   :  { %1135 = vmatmul.mubr.msk.f32.vlgmr.msra.gmra.mrb[4].mxu0 %vm165_vm3, %v1418_v26  ;;  %v1005_v26 = vld [vmem:[%s1589_s6 + $0x38] sm:$0xff] }
 0x2e2   :  { %1145 = vmatprep.mubr.msk.f32.mxu0 %vm1296_vm1, %v1297_v12  ;;  %1225 = vmatpush3.bf16.msra.mxu0 %v1224_v29  ;;  %v1227_v31 = vpack.c.bf16 %v1005_v26, %v1004_v30  ;;  %v1018_v29 = vld [vmem:[%s1594_s11] ss:$0 sm:$0xff] }
 0x2e3   :  { %1226 = vmatprep.subr.bf16.mxu0 %v1295_v11 }
 0x2e6   :  { %1228 = vmatpush3.bf16.msra.mxu0 %v1227_v31 }
 0x2e7   :  { %1235 = vmatprep.subr.bf16.mxu0 %v1295_v11 }
 0x3b0   :  { %v1508_v32 = vpop.f32.mrb[2].mxu0 }
 0x3b1   :  { %v1114_v34 = vpop.f32.mrb[3].mxu0  ;;  %v607_v35 = vmul.f32 %v606_v33, %v1508_v32 }
 0x3b4   :  { %v600_v36 = vpop.f32.mrb[4].mxu0 }
 0x3b5   :  { %v608_v37 = vadd.f32 %v607_v35, %v600_v36  ;;  %v1136_v38 = vpop.f32.mrb[5].mxu0 }
 0x3b7   :  { %1146 = vmatmul.mubr.msk.f32.vlgmr.msra.gmra.mrb[6].mxu0 %vm248_vm4, %v608_v37 }
 0x3b8   :  { %1167 = vmatprep.mubr.msk.f32.mxu0 %vm1296_vm1, %v1297_v12  ;;  %1237 = vmatpush3.bf16.msra.mxu0 %v1236_v48 }
 0x3b9   :  { %1238 = vmatprep.subr.bf16.mxu0 %v1295_v11 }
 0x3bc   :  { %1240 = vmatpush3.bf16.msra.mxu0 %v1239_v50 }
 0x48a   :  { %v683_v51 = vpop.f32.mrb[6].mxu0 }
 0x48b   :  { %v687_v52 = vsel %vm248_vm4, %v683_v51, 0.0  ;;  %v1147_v53 = vpop.f32.mrb[7].mxu0 }
 0x48c   :  { %v688_v54 = vrot.slane %v687_v52, 4 }
 0x48e   :  { %v689_v55 = vadd.f32 %v688_v54, %v687_v52 }
 0x490   :  { %v690_v56 = vrot.slane %v689_v55, 2 }
 0x492   :  { %v691_v57 = vadd.f32 %v690_v56, %v689_v55 }
 0x494   :  { %v692_v58 = vrot.slane %v691_v57, 1 }
 0x496   :  { %v693_v59 = vadd.f32 %v692_v58, %v691_v57 }
 0x498   :  { %v694_v60 = vmul.f32 0.125, %v693_v59 }
 0x49a   :  { %v695_v61 = vsub.f32 %v683_v51, %v694_v60 }
 0x49c   :  { %v696_v62 = vmul.f32 %v695_v61, %v695_v61 }
 0x49e   :  { %v697_v63 = vsel %vm248_vm4, %v696_v62, 0.0 }
 0x49f   :  { %v698_v0 = vrot.slane %v697_v63, 4 }
 0x4a1   :  { %v699_v1 = vadd.f32 %v698_v0, %v697_v63 }
 0x4a3   :  { %v700_v2 = vrot.slane %v699_v1, 2 }
 0x4a5   :  { %v701_v3 = vadd.f32 %v700_v2, %v699_v1 }
 0x4a7   :  { %v702_v4 = vrot.slane %v701_v3, 1 }
 0x4a9   :  { %v703_v5 = vadd.f32 %v702_v4, %v701_v3 }
 0x4ab   :  { %v704_v6 = vmul.f32 0.125, %v703_v5 }
 0x4ad   :  { %v705_v7 = vadd.f32 1e-05, %v704_v6 }
 0x4af   :  { %1254 = vrsqrt.f32 %v705_v7 }
 0x4b9   :  { %v1255_v8 = vpop.eup %1254 }
 0x4ba   :  { %v707_v10 = vmul.f32 %v1255_v8, %v695_v61 }
 0x4bc   :  { %v716_v14 = vmul.f32 %v1008_v9, %v707_v10 }
 0x4be   :  { %v725_v17 = vadd.f32 %v1010_v13, %v716_v14 }
 0x4c0   :  { %v726_v19 = vmax.f32 %v725_v17, 0.0 }
 0x4c2   :  { %1157 = vmatmul.mubr.msk.f32.vlgmr.msra.gmra.mrb[6].mxu1 %vm248_vm4, %v726_v19 }
 0x4c3   :  { %1243 = vmatpush3.bf16.msra.mxu1 %v1242_v18  ;;  %1178 = vmatprep.mubr.msk.f32.mxu1 %vm1296_vm1, %v1297_v12 }
 0x4c4   :  { %1244 = vmatprep.subr.bf16.mxu1 %v1295_v11 }
 0x4c7   :  { %1246 = vmatpush3.bf16.msra.mxu1 %v1245_v22 }
 0x4ca   :  { %1179 = vmatmul.mubr.msk.f32.vlgmr.msra.gmra.mrb[8].mxu1 %vm248_vm4, %v1508_v32 }
 0x595   :  { %v801_v23 = vpop.f32.mrb[6].mxu1 }
 0x596   :  { %v1158_v24 = vpop.f32.mrb[7].mxu1  ;;  %1168 = vmatmul.mubr.msk.f32.vlgmr.msra.gmra.mrb[8].mxu0 %vm248_vm4, %v801_v23 }
 0x59d   :  { %v951_v25 = vpop.f32.mrb[8].mxu1 }
 0x59e   :  { %v1180_v27 = vpop.f32.mrb[9].mxu1 }
 0x669   :  { %v878_v28 = vpop.f32.mrb[8].mxu0 }
 0x66a   :  { %v952_v12 = vadd.f32 %v951_v25, %v878_v28  ;;  %v1169_v30 = vpop.f32.mrb[9].mxu0 }
 0x66c   :  { %v962_v11 = vadd.f32 %v1018_v29, %v952_v12 }
 0x66e   :  { %964 = vst.msk [vmem:[#allocation5] sm:$0xff] %vm963_vm5, %v962_v11 }
 0x66f   :  { %1279 = shalt.err (!%p1276_p9)
}
 0x670   :  { %s1280_s30 = scalar_lea.hbm %s1595_s12, 128 }
 0x671   :  { %p1281_p10 = scmp.ne.s32.totalorder %s1595_s12, %s1280_s30  ;;  %p1284_p11 = scmp.lt.u32.totalorder %s1280_s30, %s1595_s12 }
 0x673   :  { %p1286_p12 = pnand %p1284_p11, %p1281_p10 }
 0x675   :  { %1289 = shalt.err (!%p1286_p12)
}
 0x676   :  { %974 = dma.vmem_to_hbm [thread:$0]  %s972_s28, 128, %s1595_s12, [#allocation3]  }
 0x677   :  { %1292 = dma.done.wait [#allocation3], 128  }
 0x678   :  { %1293 = vsyncadd [#allocation3], 4294967168 }
 0x679   :  { %978 = vsyncpa [#allocation3], 1 }
 0x67a   :  { %979 = vsyncpa [#allocation4], 1 }

</bundles_post_ra>
